<compile_context>
chip_gen: v7x
topology: tpu7x:2x2x1
jax: 0.10.0
libtpu: 0.0.40
codegen_flags: <defaults>
</compile_context>

<pallas_src>
import functools

import jax
import jax.numpy as jnp
from jax import lax
from jax.experimental import pallas as pl
from jax.experimental.pallas import tpu as pltpu


def _focal_loss_kernel(logits_ref, labels_ref, sum_ref, cnt_ref,
                       sum_acc, cnt_acc, *, gamma, ignore_lb, hw, tile_p,
                       needs_mask):
    j = pl.program_id(1)          # pixel-tile index (reduction axis)

    # Reset the per-lane accumulators at the start of every batch row so the
    # per-batch partials stay megacore-safe.
    @pl.when(j == 0)
    def _():
        sum_acc[...] = jnp.zeros_like(sum_acc)
        cnt_acc[...] = jnp.zeros_like(cnt_acc)

    x = logits_ref[0].astype(jnp.float32)      # (C, TILE_P): channels on sublanes
    labels = labels_ref[0]                     # (1, TILE_P) int32

    valid = labels != ignore_lb                # (1, TILE_P) bool

    if needs_mask:
        # Ragged last tile: mask out-of-range pixels and scrub garbage logits
        # (NaN/Inf in OOB lanes would otherwise poison the accumulators).
        lane = lax.broadcasted_iota(jnp.int32, (1, tile_p), 1)
        in_bounds = (j * tile_p + lane) < hw
        valid = jnp.logical_and(valid, in_bounds)
        x = jnp.where(in_bounds, x, 0.0)

    # softmax denominator over the channel (sublane) axis -- the only work
    # that has to stay at (C, TILE_P).
    m = jnp.max(x, axis=0, keepdims=True)      # (1, TILE_P)
    shifted = x - m                            # (C, TILE_P)
    ex = jnp.exp(shifted)                      # (C, TILE_P)  EUP floor
    denom = jnp.sum(ex, axis=0, keepdims=True)  # (1, TILE_P), >= 1
    log_denom = jnp.log(denom)                 # (1, TILE_P)

    # Gather the labeled channel FIRST (one-hot compare + sublane reduce),
    # then do all focal math on (1, TILE_P).
    ch = lax.broadcasted_iota(jnp.int32, shifted.shape, 0)
    onehot = ch == labels                      # (C, TILE_P)
    picked_shifted = jnp.sum(jnp.where(onehot, shifted, 0.0),
                             axis=0, keepdims=True)       # (1, TILE_P)

    log_score = picked_shifted - log_denom     # log_softmax at the label
    score = jnp.exp(log_score)                 # softmax at the label (exact)

    one_minus = 1.0 - score                    # (1, TILE_P)
    if float(gamma).is_integer() and float(gamma) >= 0:
        gi = int(gamma)
        if gi == 0:
            factor = jnp.ones_like(one_minus)
        else:
            factor = one_minus
            for _ in range(gi - 1):
                factor = factor * one_minus
    else:
        # non-integer gamma: power (log+exp on EUP) only on (1, TILE_P)
        factor = jnp.power(one_minus, jnp.float32(gamma))

    valid_f = valid.astype(jnp.float32)        # (1, TILE_P)
    sum_acc[...] += -(factor * log_score) * valid_f
    cnt_acc[...] += valid_f

    # Flush per-batch partials on the last pixel tile of this batch row.
    @pl.when(j == pl.num_programs(1) - 1)
    def _():
        sum_ref[0] = jnp.sum(sum_acc[...], keepdims=True)   # (1, 1)
        cnt_ref[0] = jnp.sum(cnt_acc[...], keepdims=True)   # (1, 1)


def _pick_tile(hw, c, itemsize, *, target_bytes=2 * 1024 * 1024, cap=65536):
    """C-aware pixel tile: ~target_bytes of logits per grid step, lane-aligned."""
    t = target_bytes // max(1, c * itemsize)
    t = int(max(128, min(cap, (t // 128) * 128)))
    if hw <= t:
        return hw            # full-extent block (always legal)
    return t                 # multiple of 128; ragged tail masked in-kernel


def softmax_focal_loss(logits, labels, *, gamma=2.0, ignore_lb=255):
    """logits: (N, C, H, W) float (f32 or bf16), labels: (N, H, W) int -> scalar."""
    N, C, H, W = logits.shape
    HW = H * W

    # Free views (no transpose, no pad, no upcast): channels -> sublanes,
    # pixels -> lanes.  bf16 logits stream at half the HBM bytes.
    x = logits.reshape(N, C, HW)
    lab = labels.reshape(N, 1, HW).astype(jnp.int32)

    itemsize = jnp.dtype(logits.dtype).itemsize
    tile_p = _pick_tile(HW, C, itemsize)
    n_tiles = pl.cdiv(HW, tile_p)
    needs_mask = (HW % tile_p) != 0

    kernel = functools.partial(
        _focal_loss_kernel, gamma=gamma, ignore_lb=ignore_lb,
        hw=HW, tile_p=tile_p, needs_mask=needs_mask)

    cost = pl.CostEstimate(
        flops=int(12 * N * C * HW),
        transcendentals=int(N * C * HW + 3 * N * HW),
        bytes_accessed=int(N * C * HW * itemsize + N * HW * 4 + 8 * N),
    )

    sum_out, cnt_out = pl.pallas_call(
        kernel,
        out_shape=(
            jax.ShapeDtypeStruct((N, 1, 1), jnp.float32),   # per-batch loss sums
            jax.ShapeDtypeStruct((N, 1, 1), jnp.float32),   # per-batch valid counts
        ),
        grid_spec=pltpu.PrefetchScalarGridSpec(
            num_scalar_prefetch=0,
            grid=(N, n_tiles),
            in_specs=[
                pl.BlockSpec((1, C, tile_p), lambda n, j: (n, 0, j)),
                pl.BlockSpec((1, 1, tile_p), lambda n, j: (n, 0, j)),
            ],
            out_specs=(
                pl.BlockSpec((1, 1, 1), lambda n, j: (n, 0, 0)),
                pl.BlockSpec((1, 1, 1), lambda n, j: (n, 0, 0)),
            ),
            scratch_shapes=[
                pltpu.VMEM((1, tile_p), jnp.float32),   # per-lane loss partials
                pltpu.VMEM((1, tile_p), jnp.float32),   # per-lane valid counts
            ],
        ),
        compiler_params=pltpu.CompilerParams(
            # batch axis "parallel" -> v7x megacore split; pixel-tile axis is
            # the running reduction so it stays "arbitrary".
            dimension_semantics=("parallel", "arbitrary"),
            # Post-trim footprint is ~a few MiB even at tile_p=65536; 32 MiB is
            # safe on v5e/v6e/v7x and above the v5e 16 MiB scoped default.
            vmem_limit_bytes=32 * 1024 * 1024,
        ),
        cost_estimate=cost,
    )(x, lab)

    # mean over non-ignored pixels (matches NLLLoss reduction='mean').
    # NOTE: if every pixel is ignore_lb this yields NaN, same as PyTorch.
    return jnp.sum(sum_out) / jnp.sum(cnt_out)


def _reference_loss(logits, labels, gamma=2.0, ignore_lb=255):
    """Pure-JAX reference mirroring the PyTorch module (computed in f32)."""
    logits = logits.astype(jnp.float32)
    scores = jax.nn.softmax(logits, axis=1)
    factor = jnp.power(1.0 - scores, gamma)
    log_score = factor * jax.nn.log_softmax(logits, axis=1)
    N, C, H, W = logits.shape
    ls = jnp.transpose(log_score, (0, 2, 3, 1)).reshape(-1, C)
    lab = labels.reshape(-1)
    valid = lab != ignore_lb
    safe_lab = jnp.where(valid, lab, 0)
    picked = jnp.take_along_axis(ls, safe_lab[:, None], axis=1)[:, 0]
    return jnp.sum(jnp.where(valid, -picked, 0.0)) / jnp.sum(valid.astype(jnp.float32))


if __name__ == "__main__":
    key = jax.random.PRNGKey(0)
    k1, k2, k3 = jax.random.split(key, 3)

    N, C, H, W = 2, 4, 16, 16
    logits = jax.random.normal(k1, (N, C, H, W), dtype=jnp.float32)
    labels = jax.random.randint(k2, (N, H, W), 0, C, dtype=jnp.int32)
    # sprinkle in some ignored pixels
    ignore_mask = jax.random.bernoulli(k3, p=0.1, shape=(N, H, W))
    labels = jnp.where(ignore_mask, 255, labels)

    # f32 path
    loss = softmax_focal_loss(logits, labels, gamma=2.0, ignore_lb=255)
    loss = jax.block_until_ready(loss)
    ref = _reference_loss(logits, labels, gamma=2.0, ignore_lb=255)
    assert jnp.allclose(loss, ref, rtol=1e-4, atol=1e-4), (loss, ref)

    # bf16 path (no wrapper upcast; f32 math inside the kernel)
    logits_bf16 = logits.astype(jnp.bfloat16)
    loss_bf16 = softmax_focal_loss(logits_bf16, labels, gamma=2.0, ignore_lb=255)
    loss_bf16 = jax.block_until_ready(loss_bf16)
    ref_bf16 = _reference_loss(logits_bf16, labels, gamma=2.0, ignore_lb=255)
    assert jnp.allclose(loss_bf16, ref_bf16, rtol=1e-2, atol=1e-2), (loss_bf16, ref_bf16)

    print("KERNEL_OK")
</pallas_src>

<mosaic_0001>
module attributes {stable_mosaic.version = 11 : i64} {
  func.func @_focal_loss_kernel(%arg0: i32, %arg1: i32, %arg2: memref<1x4x256xf32, #tpu.memory_space<vmem>>, %arg3: memref<1x1x256xi32, #tpu.memory_space<vmem>>, %arg4: memref<1x1x1xf32, #tpu.memory_space<vmem>>, %arg5: memref<1x1x1xf32, #tpu.memory_space<vmem>>, %arg6: memref<1x256xf32, #tpu.memory_space<vmem>>, %arg7: memref<1x256xf32, #tpu.memory_space<vmem>>) attributes {dimension_semantics = [#tpu.dimension_semantics<parallel>, #tpu.dimension_semantics<arbitrary>], iteration_bounds = array<i64: 2, 1>, scalar_prefetch = 0 : i64, scratch_operands = 2 : i64, tpu.core_type = #tpu.core_type<tc>, window_params = [{transform_indices = @transform_0, window_bounds = array<i64: 1, 4, 256>}, {transform_indices = @transform_1, window_bounds = array<i64: 1, 1, 256>}, {transform_indices = @transform_2, window_bounds = array<i64: 1, 1, 1>}, {transform_indices = @transform_3, window_bounds = array<i64: 1, 1, 1>}]} {
    %c0_i32 = arith.constant 0 : i32
    %0 = arith.cmpi eq, %arg1, %c0_i32 : i32
    %1 = arith.extui %0 : i1 to i32
    %c0_i32_0 = arith.constant 0 : i32
    %2 = arith.cmpi ne, %1, %c0_i32_0 : i32
    scf.if %2 {
      %cst_21 = arith.constant 0.000000e+00 : f32
      %44 = vector.broadcast %cst_21 : f32 to vector<1x256xf32>
      %c0_22 = arith.constant 0 : index
      %c0_23 = arith.constant 0 : index
      %45 = vector.load %arg6[%c0_22, %c0_23] : memref<1x256xf32, #tpu.memory_space<vmem>>, vector<1x256xf32>
      tpu.vector_store %arg6[%c0_22, %c0_23], %44 {strides = array<i32>} : memref<1x256xf32, #tpu.memory_space<vmem>>, vector<1x256xf32>,
      %cst_24 = arith.constant 0.000000e+00 : f32
      %46 = vector.broadcast %cst_24 : f32 to vector<1x256xf32>
      %c0_25 = arith.constant 0 : index
      %c0_26 = arith.constant 0 : index
      %47 = vector.load %arg7[%c0_25, %c0_26] : memref<1x256xf32, #tpu.memory_space<vmem>>, vector<1x256xf32>
      tpu.vector_store %arg7[%c0_25, %c0_26], %46 {strides = array<i32>} : memref<1x256xf32, #tpu.memory_space<vmem>>, vector<1x256xf32>,
    } else {
    }
    %c0 = arith.constant 0 : index
    %c0_1 = arith.constant 0 : index
    %c0_2 = arith.constant 0 : index
    %3 = vector.load %arg2[%c0, %c0_1, %c0_2] : memref<1x4x256xf32, #tpu.memory_space<vmem>>, vector<1x4x256xf32>
    %4 = vector.shape_cast %3 : vector<1x4x256xf32> to vector<4x256xf32>
    %c0_3 = arith.constant 0 : index
    %c0_4 = arith.constant 0 : index
    %c0_5 = arith.constant 0 : index
    %5 = vector.load %arg3[%c0_3, %c0_4, %c0_5] : memref<1x1x256xi32, #tpu.memory_space<vmem>>, vector<1x1x256xi32>
    %6 = vector.shape_cast %5 : vector<1x1x256xi32> to vector<1x256xi32>
    %c255_i32 = arith.constant 255 : i32
    %7 = vector.broadcast %c255_i32 : i32 to vector<1x256xi32>
    %8 = arith.cmpi ne, %6, %7 : vector<1x256xi32>
    %cst = arith.constant dense<0xFF800000> : vector<256xf32>
    %9 = vector.multi_reduction <maximumf>, %4, %cst [0] : vector<4x256xf32> to vector<256xf32>
    %10 = vector.shape_cast %9 : vector<256xf32> to vector<1x256xf32>
    %11 = vector.broadcast %10 : vector<1x256xf32> to vector<4x256xf32>
    %12 = arith.subf %4, %11 : vector<4x256xf32>
    %13 = math.exp %12 : vector<4x256xf32>
    %cst_6 = arith.constant dense<0.000000e+00> : vector<256xf32>
    %14 = vector.multi_reduction <add>, %13, %cst_6 [0] : vector<4x256xf32> to vector<256xf32>
    %15 = vector.shape_cast %14 : vector<256xf32> to vector<1x256xf32>
    %16 = math.log %15 : vector<1x256xf32>
    %17 = tpu.iota {dimensions = array<i32: 0>} : vector<4x256xi32>
    %18 = vector.broadcast %6 : vector<1x256xi32> to vector<4x256xi32>
    %19 = arith.cmpi eq, %17, %18 : vector<4x256xi32>
    %cst_7 = arith.constant 0.000000e+00 : f32
    %20 = vector.broadcast %cst_7 : f32 to vector<4x256xf32>
    %21 = arith.select %19, %12, %20 : vector<4x256xi1>, vector<4x256xf32>
    %cst_8 = arith.constant dense<0.000000e+00> : vector<256xf32>
    %22 = vector.multi_reduction <add>, %21, %cst_8 [0] : vector<4x256xf32> to vector<256xf32>
    %23 = vector.shape_cast %22 : vector<256xf32> to vector<1x256xf32>
    %24 = arith.subf %23, %16 : vector<1x256xf32>
    %25 = math.exp %24 : vector<1x256xf32>
    %cst_9 = arith.constant 1.000000e+00 : f32
    %26 = vector.broadcast %cst_9 : f32 to vector<1x256xf32>
    %27 = arith.subf %26, %25 : vector<1x256xf32>
    %28 = arith.mulf %27, %27 : vector<1x256xf32>
    %29 = arith.extui %8 : vector<1x256xi1> to vector<1x256xi32>
    %30 = arith.sitofp %29 : vector<1x256xi32> to vector<1x256xf32>
    %c0_10 = arith.constant 0 : index
    %c0_11 = arith.constant 0 : index
    %31 = vector.load %arg6[%c0_10, %c0_11] : memref<1x256xf32, #tpu.memory_space<vmem>>, vector<1x256xf32>
    %32 = arith.mulf %28, %24 : vector<1x256xf32>
    %cst_12 = arith.constant 0.000000e+00 : f32
    %33 = vector.broadcast %cst_12 : f32 to vector<1x256xf32>
    %34 = arith.subf %33, %32 : vector<1x256xf32>
    %35 = arith.mulf %34, %30 : vector<1x256xf32>
    %36 = arith.addf %31, %35 : vector<1x256xf32>
    %c0_13 = arith.constant 0 : index
    %c0_14 = arith.constant 0 : index
    %37 = vector.load %arg6[%c0_13, %c0_14] : memref<1x256xf32, #tpu.memory_space<vmem>>, vector<1x256xf32>
    tpu.vector_store %arg6[%c0_13, %c0_14], %36 {strides = array<i32>} : memref<1x256xf32, #tpu.memory_space<vmem>>, vector<1x256xf32>,
    %c0_15 = arith.constant 0 : index
    %c0_16 = arith.constant 0 : index
    %38 = vector.load %arg7[%c0_15, %c0_16] : memref<1x256xf32, #tpu.memory_space<vmem>>, vector<1x256xf32>
    %39 = arith.addf %38, %30 : vector<1x256xf32>
    %c0_17 = arith.constant 0 : index
    %c0_18 = arith.constant 0 : index
    %40 = vector.load %arg7[%c0_17, %c0_18] : memref<1x256xf32, #tpu.memory_space<vmem>>, vector<1x256xf32>
    tpu.vector_store %arg7[%c0_17, %c0_18], %39 {strides = array<i32>} : memref<1x256xf32, #tpu.memory_space<vmem>>, vector<1x256xf32>,
    %c0_i32_19 = arith.constant 0 : i32
    %41 = arith.cmpi eq, %arg1, %c0_i32_19 : i32
    %42 = arith.extui %41 : i1 to i32
    %c0_i32_20 = arith.constant 0 : i32
    %43 = arith.cmpi ne, %42, %c0_i32_20 : i32
    scf.if %43 {
      %c0_21 = arith.constant 0 : index
      %c0_22 = arith.constant 0 : index
      %44 = vector.load %arg6[%c0_21, %c0_22] : memref<1x256xf32, #tpu.memory_space<vmem>>, vector<1x256xf32>
      %45 = vector.shape_cast %44 : vector<1x256xf32> to vector<1x1x256xf32>
      %cst_23 = arith.constant dense<0.000000e+00> : vector<1xf32>
      %46 = vector.multi_reduction <add>, %45, %cst_23 [1, 2] : vector<1x1x256xf32> to vector<1xf32>
      %47 = vector.shape_cast %46 : vector<1xf32> to vector<1x1x1xf32>
      %48 = vector.extract %47[0, 0, 0] : f32 from vector<1x1x1xf32>
      %49 = vector.broadcast %48 : f32 to vector<1x1xf32>
      %c0_24 = arith.constant 0 : index
      %c0_25 = arith.constant 0 : index
      %c0_26 = arith.constant 0 : index
      %50 = vector.load %arg4[%c0_24, %c0_25, %c0_26] : memref<1x1x1xf32, #tpu.memory_space<vmem>>, vector<1x1x1xf32>
      %51 = vector.shape_cast %50 : vector<1x1x1xf32> to vector<1x1xf32>
      %52 = vector.shape_cast %49 : vector<1x1xf32> to vector<1x1x1xf32>
      tpu.vector_store %arg4[%c0_24, %c0_25, %c0_26], %52 {strides = array<i32>} : memref<1x1x1xf32, #tpu.memory_space<vmem>>, vector<1x1x1xf32>,
      %c0_27 = arith.constant 0 : index
      %c0_28 = arith.constant 0 : index
      %53 = vector.load %arg7[%c0_27, %c0_28] : memref<1x256xf32, #tpu.memory_space<vmem>>, vector<1x256xf32>
      %54 = vector.shape_cast %53 : vector<1x256xf32> to vector<1x1x256xf32>
      %cst_29 = arith.constant dense<0.000000e+00> : vector<1xf32>
      %55 = vector.multi_reduction <add>, %54, %cst_29 [1, 2] : vector<1x1x256xf32> to vector<1xf32>
      %56 = vector.shape_cast %55 : vector<1xf32> to vector<1x1x1xf32>
      %57 = vector.extract %56[0, 0, 0] : f32 from vector<1x1x1xf32>
      %58 = vector.broadcast %57 : f32 to vector<1x1xf32>
      %c0_30 = arith.constant 0 : index
      %c0_31 = arith.constant 0 : index
      %c0_32 = arith.constant 0 : index
      %59 = vector.load %arg5[%c0_30, %c0_31, %c0_32] : memref<1x1x1xf32, #tpu.memory_space<vmem>>, vector<1x1x1xf32>
      %60 = vector.shape_cast %59 : vector<1x1x1xf32> to vector<1x1xf32>
      %61 = vector.shape_cast %58 : vector<1x1xf32> to vector<1x1x1xf32>
      tpu.vector_store %arg5[%c0_30, %c0_31, %c0_32], %61 {strides = array<i32>} : memref<1x1x1xf32, #tpu.memory_space<vmem>>, vector<1x1x1xf32>,
    } else {
    }
    return
  }
  func.func @transform_0(%arg0: i32, %arg1: i32) -> (i32, i32, i32) {
    %c0_i32 = arith.constant 0 : i32
    %c0_i32_0 = arith.constant 0 : i32
    return %arg0, %c0_i32, %arg1 : i32, i32, i32
  }
  func.func @transform_1(%arg0: i32, %arg1: i32) -> (i32, i32, i32) {
    %c0_i32 = arith.constant 0 : i32
    %c0_i32_0 = arith.constant 0 : i32
    return %arg0, %c0_i32, %arg1 : i32, i32, i32
  }
  func.func @transform_2(%arg0: i32, %arg1: i32) -> (i32, i32, i32) {
    %c0_i32 = arith.constant 0 : i32
    %c0_i32_0 = arith.constant 0 : i32
    %c0_i32_1 = arith.constant 0 : i32
    return %arg0, %c0_i32, %c0_i32_0 : i32, i32, i32
  }
  func.func @transform_3(%arg0: i32, %arg1: i32) -> (i32, i32, i32) {
    %c0_i32 = arith.constant 0 : i32
    %c0_i32_0 = arith.constant 0 : i32
    %c0_i32_1 = arith.constant 0 : i32
    return %arg0, %c0_i32, %c0_i32_0 : i32, i32, i32
  }
}

</mosaic_0001>

<bundles_post_ra>
// kernel: tpu_custom_call.1
= control target key start
LH: loop header
LB: loop body
LE: loop exit
PB: predicated region body
PF: predicated region fallthrough
CT: control target
= control target key end

     0   :  { %9 = vsyncpa [#allocation5], 0  ;;  %s1025_s0 = inlined_call_operand.hbm [shape: f32[2,4,256], index: 0, kind: input, shape index: {}]   ;;  %s1026_s1 = inlined_call_operand.hbm [shape: s32[2,1,256], index: 1, kind: input, shape index: {}]   ;;  %s1027_s2 = inlined_call_operand.vmem [shape: f32[2,1,1], index: 2, kind: output, shape index: {0}]   ;;  %s1028_s3 = inlined_call_operand.vmem [shape: f32[2,1,1], index: 3, kind: output, shape index: {1}]  }
   0x1   :  { %11 = vsyncpa [#allocation5 + $0x1], 0 }
   0x2   :  { %12 = vsyncpa [#allocation7], 0 }
   0x3   :  { %14 = vsyncpa [#allocation7 + $0x1], 0  ;;  %s814_s12 = smov 0   ;;  %s816_s13 = smov 0  }
   0x4   :  { %s818_s14 = smov 0   ;;  %s820_s15 = smov 0  }
   0x5   :  { %s822_s16 = smov 0   ;;  %s824_s17 = smov 0  }
   0x6 LB: > { %s579_s18 = sadd.s32 4294967295, %s788_s17   ;;  %s32_s19 = sadd.s32 1, %s784_s16  ;;  %s788_s17 = sphi %s824_s17, %s20_s17   ;;  %s784_s16 = sphi %s822_s16, %s1044_s16   ;;  %s780_s15 = sphi %s820_s15, %s1043_s15   ;;  %s776_s14 = sphi %s818_s14, %s1042_s14   ;;  %s772_s13 = sphi %s816_s13, %s1041_s13   ;;  %s768_s12 = sphi %s814_s12, %s1040_s12  }
   0x7   : > { %p34_p0 = scmp.ge.s32.totalorder %s32_s19, 2  ;;  %s41_s20 = sadd.s32 1, %s776_s14 }
   0x8   : > { %p48_p1 = scmp.ne.s32.totalorder %s776_s14, %s772_s13  ;;  %p49_p2 = scmp.eq.s32.totalorder %s788_s17, 0 }
   0x9   : > { %s1046_s19 = smov (%p34_p0, %s32_s19), 0  ;;  %p54_p4 = scmp.ne.s32.totalorder %s772_s13, %s768_s12 }
   0xa   : > { %p850_p3 = por %p49_p2, %p48_p1  ;;  %s36_s22 = ssub.s32 %s784_s16, %s1046_s19 }
   0xb   : > { %p55_p5 = scmp.eq.s32.totalorder %s579_s18, 0  ;;  %p39_p6 = scmp.eq.s32.totalorder %s36_s22, 0 }
   0xc   : > { %p612_p8 = scmp.lt.s32.totalorder %s788_s17, 2  ;;  %s866_s25 = sand.u32 1, %s776_s14  }
   0xd   : > { %p857_p7 = por %p55_p5, %p54_p4  ;;  %s595_s26 = sshll.u32 %s784_s16, 7 }
   0xe   : > { %s863_s24 = scalar_select %p39_p6, %s776_s14, %s41_s20  }
   0xf   : > { %s1031_s23 = scalar_select %p857_p7, 1, 0 }
  0x10   : > { %s583_s27 = sshll.u32 %s866_s25, 3  ;;  %s873_s30 = scalar_lea.hbm %s1025_s0, %s595_s26 }
  0x11   : > { %s162_s4 = scalar_lea.vmem [#allocation4], %s583_s27  ;;  %p877_p9 = pnand %p612_p8, %p850_p3 }
  0x12   : > { %s172_s5 = sshll.u32 %s162_s4, 4  ;;  %s159_s7 = scalar_lea.sflag [#allocation5], %s866_s25  ;;  %s881_s5 = int_to_ptr.vmem [resolvable:$true] %s172_s5 }
  0x13   : > { %s674_s8 = scalar_lea.hbm %s873_s30, 128  ;;  %p676_p13 = pneg %p877_p9 }
  0x14   : > { %p675_p12 = scmp.ne.s32.totalorder %s873_s30, %s674_s8  ;;  %s679_s11 = scalar_lea.hbm %s1025_s0, 256 }
  0x15   : > { %p680_p2 = scmp.lt.u32.totalorder %s873_s30, %s1025_s0  ;;  %p681_p3 = scmp.lt.u32.totalorder %s679_s11, %s674_s8 }
  0x16   : > { %p677_p0 = pnand %p676_p13, %p675_p12  ;;  %p683_p5 = scmp.lt.u32.totalorder %s674_s8, %s873_s30 }
  0x17   : > { %p682_p4 = por %p681_p3, %p680_p2 }
  0x18   : > { %p678_p1 = pneg %p677_p0 }
  0x19   : > { %p684_p6 = por %p683_p5, %p682_p4 }
  0x1b   : > { %p685_p8 = pnand %p684_p6, %p678_p1 }
  0x1d   : > { %688 = shalt.err (!%p685_p8)
}
  0x1e   : > { %s689_s20 = scalar_lea.vmem %s881_s5, 128  ;;  %s790_s21 = smov [#allocation4]  }
  0x1f   : > { %p690_p12 = scmp.ne.s32.totalorder %s881_s5, %s689_s20  ;;  %s694_s22 = sshll.u32 %s790_s21, 4  ;;  %s695_s22 = int_to_ptr.vmem [resolvable:$false] %s694_s22 }
  0x20   : > { %s696_s26 = scalar_lea.vmem %s695_s22, 256  ;;  %p697_p11 = scmp.lt.s32.totalorder %s881_s5, %s695_s22 }
  0x21   : > { %p692_p0 = pnand %p690_p12, %p676_p13  ;;  %p698_p2 = scmp.lt.s32.totalorder %s696_s26, %s689_s20 }
  0x23   : > { %p693_p10 = pneg %p692_p0  ;;  %p699_p3 = por %p698_p2, %p697_p11 }
  0x25   : > { %p700_p4 = pnand %p699_p3, %p693_p10 }
  0x27   : > { %703 = shalt.err (!%p700_p4)
}
  0x28   : > { %608 = dma.hbm_to_vmem [thread:$0]  (!%p877_p9), %s873_s30, 128, %s881_s5, %s159_s7  }
  0x29   : > { %p1033_p1 = scmp.lt.s32.totalorder %s788_s17, 3  ;;  %p1034_p5 = scmp.ge.s32.totalorder %s788_s17, 1 }
  0x2a   : > { %s586_s28 = sshll.u32 %s866_s25, 1  ;;  %s596_s29 = sshll.u32 %s784_s16, 5 }
  0x2b   : > { %p915_p6 = pnand %p1034_p5, %p1033_p1  ;;  %s924_s9 = scalar_lea.hbm %s1026_s1, %s596_s29 }
  0x2c   : > { %s183_s10 = scalar_lea.vmem [#allocation6], %s586_s28  ;;  %s180_s30 = scalar_lea.sflag [#allocation7], %s866_s25 }
  0x2d   : > { %s1035_s27 = scalar_select %p915_p6, 1, 0 }
  0x2e   : > { %s193_s11 = sshll.u32 %s183_s10, 4  ;;  %s704_s5 = scalar_lea.hbm %s924_s9, 32  ;;  %s194_s11 = int_to_ptr.vmem [resolvable:$true] %s193_s11 }
  0x2f   : > { %p705_p10 = scmp.ne.s32.totalorder %s924_s9, %s704_s5  ;;  %s709_s18 = scalar_lea.hbm %s1026_s1, 64 }
  0x30   : > { %p710_p12 = scmp.lt.u32.totalorder %s924_s9, %s1026_s1  ;;  %p711_p0 = scmp.lt.u32.totalorder %s709_s18, %s704_s5 }
  0x31   : > { %p707_p11 = pnand %p705_p10, %p676_p13  ;;  %p713_p3 = scmp.lt.u32.totalorder %s704_s5, %s924_s9 }
  0x32   : > { %p712_p2 = por %p711_p0, %p710_p12 }
  0x33   : > { %p708_p8 = pneg %p707_p11 }
  0x34   : > { %p714_p4 = por %p713_p3, %p712_p2 }
  0x36   : > { %p715_p1 = pnand %p714_p4, %p708_p8 }
  0x38   : > { %718 = shalt.err (!%p715_p1)
}
  0x39   : > { %s719_s25 = scalar_lea.vmem %s194_s11, 32  ;;  %s791_s22 = smov [#allocation6]  }
  0x3a   : > { %p720_p5 = scmp.ne.s32.totalorder %s194_s11, %s719_s25  ;;  %s724_s26 = sshll.u32 %s791_s22, 4  ;;  %s725_s26 = int_to_ptr.vmem [resolvable:$false] %s724_s26 }
  0x3b   : > { %s726_s28 = scalar_lea.vmem %s725_s26, 64  ;;  %p727_p7 = scmp.lt.s32.totalorder %s194_s11, %s725_s26 }
  0x3c   : > { %p722_p10 = pnand %p720_p5, %p676_p13  ;;  %p728_p6 = scmp.lt.s32.totalorder %s726_s28, %s719_s25 }
  0x3e   : > { %p723_p11 = pneg %p722_p10  ;;  %p729_p0 = por %p728_p6, %p727_p7 }
  0x40   : > { %p730_p12 = pnand %p729_p0, %p723_p11 }
  0x42   : > { %733 = shalt.err (!%p730_p12)
}
  0x43   : > { %611 = dma.hbm_to_vmem [thread:$0]  (!%p877_p9), %s924_s9, 32, %s194_s11, %s180_s30  }
  0x44   : > { %p1036_p8 = scmp.ne.s32.totalorder %s1035_s27, 0 }
  0x45   : > { %s204_s29 = sand.u32 (!%p1036_p8), 1, %s772_s13   ;;  %p1037_p13 = scmp.ne.s32.totalorder (!%p1036_p8), %s1031_s23, 0 }
  0x46   : > { %202 = sbr.rel (%p1036_p8) target bundleno = 398 (0x18e), region = 28  ;;  %s590_s4 = sshll.u32 (!%p1036_p8), %s204_s29, 3 }
  0x47   : > { %s205_s8 = scalar_lea.sflag (!%p1036_p8), [#allocation5], %s204_s29  ;;  %s208_s10 = scalar_lea.vmem (!%p1036_p8), [#allocation4], %s590_s4 }
  0x4d   : > { %759 = dma.done.wait (%p1037_p13), %s205_s8, 128  }
  0x4e   : > { %761 = vsyncadd (%p1037_p13), %s205_s8, 4294967168  ;;  %s591_s5 = sshll.u32 %s204_s29, 1  ;;  %s214_s7 = scalar_lea.sflag [#allocation7], %s204_s29 }
  0x4f   : > { %s217_s6 = scalar_lea.vmem [#allocation6], %s591_s5 }
  0x50   : > { %763 = dma.done.wait (%p1037_p13), %s214_s7, 32  }
  0x51   : > { %765 = vsyncadd (%p1037_p13), %s214_s7, 4294967264  ;;  %v258_v0 = vlaneseq  ;;  %v792_v2 = vmov 0.0   ;;  %vm270_vm1 = vcmask 1043456   ;;  %v264_v3 = vld [vmem:[%s208_s10] sm:$0xff]  ;;  %v265_v4 = vld [vmem:[%s217_s6] sm:$0x3] }
  0x52   : > { %vm266_vm2 = vcmp.ne.s32.totalorder %v265_v4, 255  ;;  %v268_v5 = vcombine.high %v264_v3, %v264_v3  ;;  %v271_v6 = vsel %vm270_vm1, %v264_v3, -inf  ;;  %vm416_vm5 = vcmask 1040384   ;;  %p248_p7 = scmp.lt.s32.totalorder %s780_s15, 1 }
  0x53   : > { %vm957_vm0 = vcmp.lt.s32.totalorder %v258_v0, 256  ;;  %v272_v7 = vrot.slane %v271_v6, 4  ;;  %v967_v9 = vsel %vm266_vm2, 1.0, %v792_v2  ;;  %v972_v23 = vshrl.u32 %v258_v0, 7 }
  0x54   : > { %262 = vst.msk [vmem:[#allocation2] sm:$0x3] %vm957_vm0, %v792_v2  ;;  %263 = vst.msk [vmem:[#allocation3] sm:$0x3] %vm957_vm0, %v792_v2  ;;  %v278_v8 = vsel %vm270_vm1, %v268_v5, -inf  ;;  %s1048_s15 = smov (!%p248_p7, %s780_s15), 1 }
  0x55   : > { %v273_v11 = vmax.f32 %v271_v6, %v272_v7  ;;  %v279_v12 = vrot.slane %v278_v8, 4  ;;  %v975_v26 = vsub.s32 0, %v972_v23  ;;  %v978_v28 = vsub.s32 1, %v972_v23  ;;  %s250_s9 = scalar_lea.vmem %s1027_s2, %s1048_s15  ;;  %s253_s18 = scalar_lea.vmem %s1028_s3, %s1048_s15 }
  0x56   : > { %vm430_vm6 = vcmask 0  }
  0x57   : > { %v274_v14 = vrot.slane %v273_v11, 2  ;;  %v280_v15 = vmax.f32 %v278_v8, %v279_v12  ;;  %v318_v29 = vrot.slane %v265_v4, %v975_v26  ;;  %v322_v30 = vrot.slane %v265_v4, %v978_v28 }
  0x59   : > { %v275_v16 = vmax.f32 %v273_v11, %v274_v14  ;;  %v281_v17 = vrot.slane %v280_v15, 2  ;;  %vm323_vm3 = vcmp.eq.s32.totalorder %v972_v23, %v318_v29  ;;  %vm324_vm4 = vcmp.eq.s32.totalorder %v972_v23, %v322_v30 }
  0x5b   : > { %v398_v10 = vld [vmem:[#allocation3] sm:$0x3]  ;;  %v276_v18 = vrot.slane %v275_v16, 1  ;;  %v282_v19 = vmax.f32 %v280_v15, %v281_v17  ;;  %v793_v15 = vmov 1966171168  }
  0x5c   : > { %v399_v13 = vadd.f32 %v967_v9, %v398_v10 }
  0x5d   : > { %v277_v20 = vmax.f32 %v275_v16, %v276_v18  ;;  %v283_v21 = vrot.slane %v282_v19, 1  ;;  %v378_v16 = vunpack.c.l.s4 %v793_v15 }
  0x5e   : > { %400 = vst.msk [vmem:[#allocation3] sm:$0x3] %vm957_vm0, %v399_v13 }
  0x5f   : > { %v284_v22 = vmax.f32 %v282_v19, %v283_v21  ;;  %v365_v19 = vrot.slane %v967_v9, %v975_v26 }
  0x61   : > { %v287_v24 = vcombine.low %v277_v20, %v284_v22  ;;  %v369_v22 = vrot.slane %v967_v9, %v978_v28 }
  0x63   : > { %v289_v25 = vsub.f32 %v264_v3, %v287_v24  ;;  %v379_v24 = vunpack.c.0.s8 %v378_v16 }
  0x65   : > { %v290_v27 = vmul.f32 1.442695, %v289_v25  ;;  %v326_v31 = vcombine.high %v289_v25, %v289_v25  ;;  %v328_v32 = vsel %vm323_vm3, %v289_v25, 0.0  ;;  %v382_v30 = vsub.s32 %v379_v24, %v972_v23 }
  0x66   : > { %v330_v35 = vsel %vm270_vm1, %v328_v32, 0.0 }
  0x67   : > { %664 = vpow2.f32 %v290_v27  ;;  %v329_v33 = vsel %vm324_vm4, %v326_v31, 0.0  ;;  %v331_v41 = vrot.slane %v330_v35, 4 }
  0x68   : > { %v337_v39 = vsel %vm270_vm1, %v329_v33, 0.0  ;;  %v356_v33 = vld [vmem:[#allocation2] sm:$0x3] }
  0x69   : > { %v338_v44 = vrot.slane %v337_v39, 4  ;;  %v332_v47 = vadd.f32 %v331_v41, %v330_v35 }
  0x6b   : > { %v339_v50 = vadd.f32 %v338_v44, %v337_v39  ;;  %v333_v53 = vrot.slane %v332_v47, 2 }
  0x6d   : > { %v340_v56 = vrot.slane %v339_v50, 2  ;;  %v334_v58 = vadd.f32 %v333_v53, %v332_v47 }
  0x6f   : > { %v341_v59 = vadd.f32 %v340_v56, %v339_v50  ;;  %v335_v60 = vrot.slane %v334_v58, 1 }
  0x71   : > { %v665_v34 = vpop.eup %664  ;;  %v342_v61 = vrot.slane %v341_v59, 1  ;;  %v336_v62 = vadd.f32 %v335_v60, %v334_v58 }
  0x72   : > { %v293_v36 = vcombine.high %v665_v34, %v665_v34  ;;  %v295_v37 = vsel %vm270_vm1, %v665_v34, 0.0 }
  0x73   : > { %v296_v38 = vrot.slane %v295_v37, 4  ;;  %v343_v2 = vadd.f32 %v342_v61, %v341_v59 }
  0x74   : > { %v302_v40 = vsel %vm270_vm1, %v293_v36, 0.0  ;;  %v432_v36 = vld [vmem:[#allocation3] sm:$0x3] }
  0x75   : > { %v297_v42 = vadd.f32 %v296_v38, %v295_v37  ;;  %v303_v43 = vrot.slane %v302_v40, 4  ;;  %v437_v37 = vrot.slane %v432_v36, %v975_v26  ;;  %v441_v38 = vrot.slane %v432_v36, %v978_v28 }
  0x77   : > { %v298_v45 = vrot.slane %v297_v42, 2  ;;  %v304_v46 = vadd.f32 %v303_v43, %v302_v40  ;;  %v445_v43 = vsel %vm416_vm5, %v441_v38, 0.0 }
  0x79   : > { %v299_v48 = vadd.f32 %v298_v45, %v297_v42  ;;  %v305_v49 = vrot.slane %v304_v46, 2  ;;  %v444_v42 = vsel %vm416_vm5, %v437_v37, 0.0 }
  0x7a   : > { %v446_v45 = vadd.f32 %v445_v43, %v444_v42 }
  0x7b   : > { %v300_v51 = vrot.slane %v299_v48, 1  ;;  %v306_v52 = vadd.f32 %v305_v49, %v304_v46 }
  0x7d   : > { %v301_v54 = vadd.f32 %v300_v51, %v299_v48  ;;  %v307_v55 = vrot.slane %v306_v52, 1 }
  0x7f   : > { %v308_v57 = vadd.f32 %v307_v55, %v306_v52  ;;  %666 = vlog2.f32 %v301_v54 }
  0x81   : > { %668 = vlog2.f32 %v308_v57 }
  0x89   : > { %v667_v63 = vpop.eup %666 }
  0x8a   : > { %v310_v0 = vmul.f32 0.6931472, %v667_v63 }
  0x8b   : > { %v669_v3 = vpop.eup %668 }
  0x8c   : > { %v312_v4 = vmul.f32 0.6931472, %v669_v3  ;;  %v344_v5 = vsub.f32 %v336_v62, %v310_v0 }
  0x8e   : > { %v345_v6 = vsub.f32 %v343_v2, %v312_v4  ;;  %v346_v7 = vmul.f32 1.442695, %v344_v5 }
  0x90   : > { %670 = vpow2.f32 %v346_v7  ;;  %v348_v8 = vmul.f32 1.442695, %v345_v6 }
  0x92   : > { %672 = vpow2.f32 %v348_v8 }
  0x9a   : > { %v671_v10 = vpop.eup %670 }
  0x9b   : > { %v350_v11 = vsub.f32 1.0, %v671_v10 }
  0x9c   : > { %v673_v12 = vpop.eup %672 }
  0x9d   : > { %v351_v13 = vsub.f32 1.0, %v673_v12  ;;  %v352_v14 = vmul.f32 %v350_v11, %v350_v11 }
  0x9f   : > { %v353_v17 = vmul.f32 %v351_v13, %v351_v13  ;;  %v357_v18 = vmul.f32 %v352_v14, %v344_v5 }
  0xa1   : > { %v358_v20 = vmul.f32 %v353_v17, %v345_v6  ;;  %v359_v21 = vsub.f32 0.0, %v357_v18 }
  0xa3   : > { %v360_v25 = vsub.f32 0.0, %v358_v20  ;;  %v372_v27 = vmul.f32 %v365_v19, %v359_v21 }
  0xa5   : > { %v373_v29 = vmul.f32 %v369_v22, %v360_v25 }
  0xa7   : > { %v376_v31 = vcombine.low %v372_v27, %v373_v29 }
  0xa9   : > { %v383_v32 = vrot.slane %v376_v31, %v382_v30 }
  0xab   : > { %v390_v34 = vrot.slane %v383_v32, %v382_v30 }
  0xad   : > { %v392_v35 = vadd.f32 %v390_v34, %v356_v33 }
  0xaf   : > { %397 = vst.msk [vmem:[#allocation2] sm:$0x3] %vm957_vm0, %v392_v35 }
  0xb6   : > { %v404_v9 = vld [vmem:[#allocation2] sm:$0x3] }
  0xb7   : > { %v409_v39 = vrot.slane %v404_v9, %v975_v26  ;;  %v413_v40 = vrot.slane %v404_v9, %v978_v28 }
  0xb9   : > { %v417_v23 = vsel %vm416_vm5, %v409_v39, 0.0  ;;  %v418_v41 = vsel %vm416_vm5, %v413_v40, 0.0 }
  0xba   : > { %v419_v44 = vadd.f32 %v418_v41, %v417_v23 }
  0xbc   : > { %420 = vadd.xlane.f32.xlu0 %v419_v44 }
  0xc0   : > { %447 = vadd.xlane.f32.xlu0 %v446_v45 }
 0x149   : > { %v421_v1 = vpop.xlane.xlu0 %420 }
 0x14a   : > { %v422_v46 = vrot.slane %v421_v1, 4 }
 0x14c   : > { %v423_v47 = vadd.f32 %v422_v46, %v421_v1 }
 0x14d   : > { %v448_v48 = vpop.xlane.xlu0 %447 }
 0x14e   : > { %v424_v49 = vrot.slane %v423_v47, 2  ;;  %v449_v50 = vrot.slane %v448_v48, 4 }
 0x150   : > { %v450_v51 = vadd.f32 %v449_v50, %v448_v48  ;;  %v425_v26 = vadd.f32 %v424_v49, %v423_v47 }
 0x152   : > { %v451_v52 = vrot.slane %v450_v51, 2  ;;  %v426_v28 = vrot.slane %v425_v26, 1 }
 0x154   : > { %v452_v53 = vadd.f32 %v451_v52, %v450_v51  ;;  %v427_v54 = vadd.f32 %v426_v28, %v425_v26 }
 0x156   : > { %597 = vpush %v427_v54  ;;  %v453_v55 = vrot.slane %v452_v53, 1 }
 0x158   : > { %v454_v56 = vadd.f32 %v453_v55, %v452_v53 }
 0x15a   : > { %599 = vpush %v454_v56 }
 0x187   : > { %s598_s11 = spop %597 }
 0x188   : > { %v429_v57 = vstv %s598_s11 }
 0x189   : > { %431 = vst.msk [vmem:[%s250_s9] sm:$0x1] %vm430_vm6, %v429_v57 }
 0x18b   : > { %s600_s20 = spop %599 }
 0x18c   : > { %v456_v58 = vstv %s600_s20 }
 0x18d   : > { %457 = vst.msk [vmem:[%s253_s18] sm:$0x1] %vm430_vm6, %v456_v58 }
 0x18e PF: > { %s20_s17 = sadd.s32 1, %s788_s17   ;;  %s1040_s12 = smov %s772_s13 }
 0x18f   : > { %p17_p9 = scmp.ge.s32.totalorder %s20_s17, 4   ;;  %s1041_s13 = smov %s776_s14 }
 0x190   : > { %s1042_s14 = smov %s863_s24  ;;  %s1043_s15 = smov %s784_s16 }
 0x191   : > { %s1044_s16 = smov %s1046_s19  ;;  %19 = sbr.rel (!%p17_p9) target bundleno = 6 (0x6), region = 101 }
 0x198   :  { %487 = vsyncpa [#allocation5], 1 }
 0x199   :  { %489 = vsyncpa [#allocation5 + $0x1], 1 }
 0x19a   :  { %490 = vsyncpa [#allocation7], 1 }
 0x19b   :  { %492 = vsyncpa [#allocation7 + $0x1], 1 }

</bundles_post_ra>
